<compile_context>
chip_gen: v7x
topology: tpu7x:2x2x1
jax: 0.10.0
libtpu: 0.0.40
codegen_flags: <defaults>
</compile_context>

<pallas_src>
import functools
import math

import jax
import jax.numpy as jnp
from jax.experimental import pallas as pl
from jax.experimental.pallas import tpu as pltpu

LANES = 128
SUBLANES = 8
CHUNK_ROWS = 512  # rows per in-kernel compute chunk (bounds VMEM temporaries)


def _round_up(x, m):
    return (x + m - 1) // m * m


def _chip_defaults(has_weights):
    """Generation-dependent (ncores, max_tile_rows, vmem_limit_bytes)."""
    try:
        kind = jax.devices()[0].device_kind.lower()
    except Exception:
        kind = ""
    if "v5 lite" in kind or "v5lite" in kind or "v5e" in kind:
        # v5e: 1 TC, 16 MiB scoped-VMEM default -> 1 MiB (2048-row) f32 blocks.
        return 1, 2048, None
    if "v6" in kind:
        # v6e: 1 TC, 128 MiB VMEM; bigger blocks amortize the ~0.35us/step cost.
        return 1, (4096 if has_weights else 8192), 64 * 1024 * 1024
    if "v7" in kind or "7x" in kind:
        # v7x: 2 TCs, 64 MiB VMEM/TC; cap with-weights blocks to stay in budget.
        return 2, (4096 if has_weights else 8192), 48 * 1024 * 1024
    if "v4" in kind or "v5p" in kind or "v5" in kind:
        # Megacore chips (2 TCs behind one device).
        return 2, 4096, 64 * 1024 * 1024
    # Unknown chip / interpret mode: conservative defaults.
    return 1, 2048, None


def _dice_sums_kernel(*refs, tile_rows, rows, spc, act, has_weights, needs_mask):
    if has_weights:
        p_ref, g_ref, m_ref, w_ref, out_ref = refs
    else:
        p_ref, g_ref, m_ref, out_ref = refs
        w_ref = None

    @pl.when(pl.program_id(1) == 0)
    def _init():
        out_ref[...] = jnp.zeros_like(out_ref)

    step = pl.program_id(0) * spc + pl.program_id(1)
    block_start = step * tile_rows

    def accumulate(masked):
        acc_i = jnp.zeros((SUBLANES, LANES), jnp.float32)
        acc_p = jnp.zeros((SUBLANES, LANES), jnp.float32)
        acc_g = jnp.zeros((SUBLANES, LANES), jnp.float32)
        for c0 in range(0, tile_rows, CHUNK_ROWS):
            cr = min(CHUNK_ROWS, tile_rows - c0)
            sl = pl.ds(c0, cr)
            p = p_ref[sl, :].astype(jnp.float32)
            if act:
                # sigmoid(x) = (1 + tanh(x/2)) / 2 : a single EUP op per vreg.
                p = 0.5 * (jnp.tanh(0.5 * p) + 1.0)
            g = g_ref[sl, :].astype(jnp.float32)
            m = m_ref[sl, :].astype(jnp.float32)
            if has_weights:
                m = m * w_ref[sl, :].astype(jnp.float32)
            if masked:
                # Zero rows past the true row count (partial last block).  All
                # three streams are zeroed so garbage (possibly NaN) values in
                # the unspecified tail of the block can never reach the sums.
                row_ids = jax.lax.broadcasted_iota(jnp.int32, (cr, LANES), 0)
                valid = (block_start + c0 + row_ids) < rows
                zero = jnp.zeros_like(p)
                p = jnp.where(valid, p, zero)
                g = jnp.where(valid, g, zero)
                m = jnp.where(valid, m, zero)
            pm = p * m
            gm = g * m
            inter = pm * g  # == p * g * m; reusing pm saves one multiply

            def fold(x):  # (cr, 128) -> (8, 128): pure VPU vreg adds
                return x.reshape(cr // SUBLANES, SUBLANES, LANES).sum(axis=0)

            acc_i = acc_i + fold(inter)
            acc_p = acc_p + fold(pm)
            acc_g = acc_g + fold(gm)
        out_ref[0] += acc_i   # intersection partial
        out_ref[1] += acc_p   # sum(pred * mask) partial
        out_ref[2] += acc_g   # sum(gt * mask) partial

    if not needs_mask:
        accumulate(False)
    else:
        full = block_start + tile_rows <= rows

        @pl.when(full)
        def _full():
            accumulate(False)

        partial = jnp.logical_and(block_start < rows, jnp.logical_not(full))

        @pl.when(partial)
        def _partial():
            accumulate(True)
        # Fully out-of-range (clamp-duplicated) blocks do no compute at all.


@functools.partial(jax.jit, static_argnames=("eps", "act"))
def dice_loss(pred, gt, mask, weights=None, *, eps=1e-6, act=False):
    """Pallas implementation of DiceLoss(eps, act, reduce=True).forward."""
    # TODO(synk): reduce=False (per-sample) branch of the module is not implemented.
    assert pred.shape == gt.shape
    assert pred.shape == mask.shape
    if weights is not None:
        assert weights.shape == mask.shape

    has_weights = weights is not None
    inputs_nd = [pred, gt, mask] + ([weights] if has_weights else [])

    total = math.prod(pred.shape)
    rows = total // LANES
    rem = total - rows * LANES

    # Ragged (<128-element) tail: summed in plain JAX, no full-array pad copy.
    tail_sums = jnp.zeros((3,), jnp.float32)
    if rem:
        def tail(x):
            return x.reshape(-1)[rows * LANES:].astype(jnp.float32)
        pt = tail(pred)
        if act:
            pt = jax.nn.sigmoid(pt)
        gt_t = tail(gt)
        mt = tail(mask)
        if has_weights:
            mt = mt * tail(weights)
        tail_sums = jnp.stack(
            [jnp.sum(pt * gt_t * mt), jnp.sum(pt * mt), jnp.sum(gt_t * mt)])

    if rows == 0:
        sums = tail_sums
    else:
        ncores, max_tile_rows, vmem_limit = _chip_defaults(has_weights)

        # Sub-32-bit dtypes pack along sublanes: keep block rows a multiple of
        # the packed sublane count of the narrowest input.
        min_itemsize = min(jnp.dtype(x.dtype).itemsize for x in inputs_nd)
        sublane_req = max(SUBLANES, 32 // max(min_itemsize, 1))

        per_core_rows = pl.cdiv(rows, ncores)
        tile_rows = min(max_tile_rows, _round_up(per_core_rows, sublane_req))
        steps = pl.cdiv(rows, tile_rows)          # total number of row tiles
        ncores = min(ncores, steps)               # never more cores than tiles
        spc = pl.cdiv(steps, ncores)              # tiles per leading-axis slot
        covered = (ncores * spc == steps)
        needs_mask = (steps * tile_rows != rows) or (not covered)

        def to2d(x):
            flat = x.reshape(-1)                  # metadata-only for contiguous x
            if rem:
                # Only for non-128-aligned sizes: aligned prefix (never a pad of
                # the full array).
                flat = jax.lax.slice(flat, (0,), (rows * LANES,))
            return flat.reshape(rows, LANES)

        inputs2d = [to2d(x) for x in inputs_nd]

        if covered:
            in_idx = lambda c, s: (c * spc + s, 0)
        else:
            # Clamp so the DMA never indexes past the last block; duplicated
            # blocks are skipped entirely by the in-kernel pl.when gate.
            last = steps - 1
            in_idx = lambda c, s: (jnp.minimum(c * spc + s, last), 0)

        in_spec = pl.BlockSpec((tile_rows, LANES), in_idx)
        out_spec = pl.BlockSpec((None, 3, SUBLANES, LANES),
                                lambda c, s: (c, 0, 0, 0))

        kernel = functools.partial(
            _dice_sums_kernel,
            tile_rows=tile_rows,
            rows=rows,
            spc=spc,
            act=act,
            has_weights=has_weights,
            needs_mask=needs_mask,
        )

        cp_kwargs = dict(dimension_semantics=("parallel", "arbitrary"))
        if vmem_limit is not None:
            cp_kwargs["vmem_limit_bytes"] = vmem_limit

        acc = pl.pallas_call(
            kernel,
            out_shape=jax.ShapeDtypeStruct((ncores, 3, SUBLANES, LANES),
                                           jnp.float32),
            grid_spec=pltpu.PrefetchScalarGridSpec(
                num_scalar_prefetch=0,
                grid=(ncores, spc),
                in_specs=[in_spec] * len(inputs2d),
                out_specs=out_spec,
            ),
            compiler_params=pltpu.CompilerParams(**cp_kwargs),
        )(*inputs2d)

        sums = jnp.sum(acc, axis=(0, 2, 3)) + tail_sums

    intersection = sums[0]
    union = sums[1] + sums[2] + eps
    return 1.0 - 2.0 * intersection / union


def dice_loss_ref(pred, gt, mask, weights=None, *, eps=1e-6, act=False):
    if weights is not None:
        mask = weights * mask
    if act:
        pred = jax.nn.sigmoid(pred)
    pred = pred.astype(jnp.float32)
    gt = gt.astype(jnp.float32)
    mask = mask.astype(jnp.float32)
    intersection = jnp.sum(pred * gt * mask)
    union = jnp.sum(pred * mask) + jnp.sum(gt * mask) + eps
    return 1.0 - 2.0 * intersection / union


if __name__ == "__main__":
    key = jax.random.PRNGKey(0)
    k1, k2, k3, k4 = jax.random.split(key, 4)

    # Small NCHW shapes consistent with the PyTorch module's inputs.
    N, C, H, W = 2, 4, 16, 16
    pred = jax.random.uniform(k1, (N, C, H, W), dtype=jnp.float32)
    gt = (jax.random.uniform(k2, (N, C, H, W)) > 0.5).astype(jnp.float32)
    mask = (jax.random.uniform(k3, (N, C, H, W)) > 0.2).astype(jnp.float32)
    weights = jax.random.uniform(k4, (N, C, H, W), dtype=jnp.float32)

    # Default path (act=False, no weights).
    loss = jax.block_until_ready(dice_loss(pred, gt, mask))
    ref = dice_loss_ref(pred, gt, mask)
    assert jnp.allclose(loss, ref, rtol=1e-5, atol=1e-5), (loss, ref)
    assert float(loss) <= 1.0

    # Fused weights path.
    loss_w = jax.block_until_ready(dice_loss(pred, gt, mask, weights))
    ref_w = dice_loss_ref(pred, gt, mask, weights)
    assert jnp.allclose(loss_w, ref_w, rtol=1e-5, atol=1e-5), (loss_w, ref_w)

    # act=True path (in-kernel single-EUP sigmoid).
    loss_a = jax.block_until_ready(dice_loss(pred, gt, mask, act=True))
    ref_a = dice_loss_ref(pred, gt, mask, act=True)
    assert jnp.allclose(loss_a, ref_a, rtol=1e-4, atol=1e-5), (loss_a, ref_a)

    # Mixed dtypes: binary gt/mask in bf16 (exact 0/1) halves their HBM bytes.
    loss_h = jax.block_until_ready(
        dice_loss(pred, gt.astype(jnp.bfloat16), mask.astype(jnp.bfloat16)))
    assert jnp.allclose(loss_h, ref, rtol=1e-5, atol=1e-5), (loss_h, ref)

    # Larger input: multiple grid steps per core on every generation.
    kb1, kb2, kb3 = jax.random.split(jax.random.PRNGKey(1), 3)
    Nb, Cb, Hb, Wb = 4, 4, 512, 512
    pred_b = jax.random.uniform(kb1, (Nb, Cb, Hb, Wb), dtype=jnp.float32)
    gt_b = (jax.random.uniform(kb2, (Nb, Cb, Hb, Wb)) > 0.5).astype(jnp.float32)
    mask_b = (jax.random.uniform(kb3, (Nb, Cb, Hb, Wb)) > 0.2).astype(jnp.float32)
    loss_b = jax.block_until_ready(dice_loss(pred_b, gt_b, mask_b))
    ref_b = dice_loss_ref(pred_b, gt_b, mask_b)
    assert jnp.allclose(loss_b, ref_b, rtol=1e-4, atol=1e-5), (loss_b, ref_b)

    # Ragged size (numel % 128 != 0): aligned prefix in-kernel + JAX tail.
    kr1, kr2, kr3 = jax.random.split(jax.random.PRNGKey(2), 3)
    shape_r = (2, 3, 37, 41)  # 9102 elements = 71*128 + 14
    pred_r = jax.random.uniform(kr1, shape_r, dtype=jnp.float32)
    gt_r = (jax.random.uniform(kr2, shape_r) > 0.5).astype(jnp.float32)
    mask_r = (jax.random.uniform(kr3, shape_r) > 0.2).astype(jnp.float32)
    loss_r = jax.block_until_ready(dice_loss(pred_r, gt_r, mask_r))
    ref_r = dice_loss_ref(pred_r, gt_r, mask_r)
    assert jnp.allclose(loss_r, ref_r, rtol=1e-5, atol=1e-5), (loss_r, ref_r)

    print("KERNEL_OK")
</pallas_src>

<mosaic_0001>
module attributes {stable_mosaic.version = 11 : i64} {
  func.func @_dice_sums_kernel(%arg0: i32, %arg1: i32, %arg2: memref<16x128xf32, #tpu.memory_space<vmem>>, %arg3: memref<16x128xf32, #tpu.memory_space<vmem>>, %arg4: memref<16x128xf32, #tpu.memory_space<vmem>>, %arg5: memref<1x3x8x128xf32, #tpu.memory_space<vmem>>) attributes {dimension_semantics = [#tpu.dimension_semantics<parallel>, #tpu.dimension_semantics<arbitrary>], iteration_bounds = array<i64: 1, 1>, scalar_prefetch = 0 : i64, scratch_operands = 0 : i64, tpu.core_type = #tpu.core_type<tc>, window_params = [{transform_indices = @transform_0, window_bounds = array<i64: 16, 128>}, {transform_indices = @transform_1, window_bounds = array<i64: 16, 128>}, {transform_indices = @transform_2, window_bounds = array<i64: 16, 128>}, {transform_indices = @transform_3, window_bounds = array<i64: 1, 3, 8, 128>}]} {
    %c0_i32 = arith.constant 0 : i32
    %0 = arith.cmpi eq, %arg1, %c0_i32 : i32
    %1 = arith.extui %0 : i1 to i32
    %c0_i32_0 = arith.constant 0 : i32
    %2 = arith.cmpi ne, %1, %c0_i32_0 : i32
    scf.if %2 {
      %cst_33 = arith.constant 0.000000e+00 : f32
      %39 = vector.broadcast %cst_33 : f32 to vector<3x8x128xf32>
      %c0_34 = arith.constant 0 : index
      %c0_35 = arith.constant 0 : index
      %c0_36 = arith.constant 0 : index
      %c0_37 = arith.constant 0 : index
      %40 = vector.load %arg5[%c0_34, %c0_35, %c0_36, %c0_37] : memref<1x3x8x128xf32, #tpu.memory_space<vmem>>, vector<1x3x8x128xf32>
      %41 = vector.shape_cast %40 : vector<1x3x8x128xf32> to vector<3x8x128xf32>
      %42 = vector.shape_cast %39 : vector<3x8x128xf32> to vector<1x3x8x128xf32>
      tpu.vector_store %arg5[%c0_34, %c0_35, %c0_36, %c0_37], %42 {strides = array<i32>} : memref<1x3x8x128xf32, #tpu.memory_space<vmem>>, vector<1x3x8x128xf32>,
    } else {
    }
    %cst = arith.constant 0.000000e+00 : f32
    %3 = vector.broadcast %cst : f32 to vector<8x128xf32>
    %cst_1 = arith.constant 0.000000e+00 : f32
    %4 = vector.broadcast %cst_1 : f32 to vector<8x128xf32>
    %cst_2 = arith.constant 0.000000e+00 : f32
    %5 = vector.broadcast %cst_2 : f32 to vector<8x128xf32>
    %c0 = arith.constant 0 : index
    %c0_3 = arith.constant 0 : index
    %6 = vector.load %arg2[%c0, %c0_3] : memref<16x128xf32, #tpu.memory_space<vmem>>, vector<16x128xf32>
    %c0_4 = arith.constant 0 : index
    %c0_5 = arith.constant 0 : index
    %7 = vector.load %arg3[%c0_4, %c0_5] : memref<16x128xf32, #tpu.memory_space<vmem>>, vector<16x128xf32>
    %c0_6 = arith.constant 0 : index
    %c0_7 = arith.constant 0 : index
    %8 = vector.load %arg4[%c0_6, %c0_7] : memref<16x128xf32, #tpu.memory_space<vmem>>, vector<16x128xf32>
    %9 = arith.mulf %6, %8 : vector<16x128xf32>
    %10 = arith.mulf %7, %8 : vector<16x128xf32>
    %11 = arith.mulf %9, %7 : vector<16x128xf32>
    %12 = vector.shape_cast %11 : vector<16x128xf32> to vector<2x8x128xf32>
    %cst_8 = arith.constant dense<0.000000e+00> : vector<8x128xf32>
    %13 = vector.multi_reduction <add>, %12, %cst_8 [0] : vector<2x8x128xf32> to vector<8x128xf32>
    %14 = arith.addf %3, %13 : vector<8x128xf32>
    %15 = vector.shape_cast %9 : vector<16x128xf32> to vector<2x8x128xf32>
    %cst_9 = arith.constant dense<0.000000e+00> : vector<8x128xf32>
    %16 = vector.multi_reduction <add>, %15, %cst_9 [0] : vector<2x8x128xf32> to vector<8x128xf32>
    %17 = arith.addf %4, %16 : vector<8x128xf32>
    %18 = vector.shape_cast %10 : vector<16x128xf32> to vector<2x8x128xf32>
    %cst_10 = arith.constant dense<0.000000e+00> : vector<8x128xf32>
    %19 = vector.multi_reduction <add>, %18, %cst_10 [0] : vector<2x8x128xf32> to vector<8x128xf32>
    %20 = arith.addf %5, %19 : vector<8x128xf32>
    %c0_11 = arith.constant 0 : index
    %c0_12 = arith.constant 0 : index
    %c0_13 = arith.constant 0 : index
    %c0_14 = arith.constant 0 : index
    %21 = vector.load %arg5[%c0_11, %c0_12, %c0_13, %c0_14] : memref<1x3x8x128xf32, #tpu.memory_space<vmem>>, vector<1x1x8x128xf32>
    %22 = vector.shape_cast %21 : vector<1x1x8x128xf32> to vector<8x128xf32>
    %23 = arith.addf %22, %14 : vector<8x128xf32>
    %c0_15 = arith.constant 0 : index
    %c0_16 = arith.constant 0 : index
    %c0_17 = arith.constant 0 : index
    %c0_18 = arith.constant 0 : index
    %24 = vector.load %arg5[%c0_15, %c0_16, %c0_17, %c0_18] : memref<1x3x8x128xf32, #tpu.memory_space<vmem>>, vector<1x1x8x128xf32>
    %25 = vector.shape_cast %24 : vector<1x1x8x128xf32> to vector<8x128xf32>
    %26 = vector.shape_cast %23 : vector<8x128xf32> to vector<1x1x8x128xf32>
    tpu.vector_store %arg5[%c0_15, %c0_16, %c0_17, %c0_18], %26 {strides = array<i32>} : memref<1x3x8x128xf32, #tpu.memory_space<vmem>>, vector<1x1x8x128xf32>,
    %c0_19 = arith.constant 0 : index
    %c1 = arith.constant 1 : index
    %c0_20 = arith.constant 0 : index
    %c0_21 = arith.constant 0 : index
    %27 = vector.load %arg5[%c0_19, %c1, %c0_20, %c0_21] : memref<1x3x8x128xf32, #tpu.memory_space<vmem>>, vector<1x1x8x128xf32>
    %28 = vector.shape_cast %27 : vector<1x1x8x128xf32> to vector<8x128xf32>
    %29 = arith.addf %28, %17 : vector<8x128xf32>
    %c0_22 = arith.constant 0 : index
    %c1_23 = arith.constant 1 : index
    %c0_24 = arith.constant 0 : index
    %c0_25 = arith.constant 0 : index
    %30 = vector.load %arg5[%c0_22, %c1_23, %c0_24, %c0_25] : memref<1x3x8x128xf32, #tpu.memory_space<vmem>>, vector<1x1x8x128xf32>
    %31 = vector.shape_cast %30 : vector<1x1x8x128xf32> to vector<8x128xf32>
    %32 = vector.shape_cast %29 : vector<8x128xf32> to vector<1x1x8x128xf32>
    tpu.vector_store %arg5[%c0_22, %c1_23, %c0_24, %c0_25], %32 {strides = array<i32>} : memref<1x3x8x128xf32, #tpu.memory_space<vmem>>, vector<1x1x8x128xf32>,
    %c0_26 = arith.constant 0 : index
    %c2 = arith.constant 2 : index
    %c0_27 = arith.constant 0 : index
    %c0_28 = arith.constant 0 : index
    %33 = vector.load %arg5[%c0_26, %c2, %c0_27, %c0_28] : memref<1x3x8x128xf32, #tpu.memory_space<vmem>>, vector<1x1x8x128xf32>
    %34 = vector.shape_cast %33 : vector<1x1x8x128xf32> to vector<8x128xf32>
    %35 = arith.addf %34, %20 : vector<8x128xf32>
    %c0_29 = arith.constant 0 : index
    %c2_30 = arith.constant 2 : index
    %c0_31 = arith.constant 0 : index
    %c0_32 = arith.constant 0 : index
    %36 = vector.load %arg5[%c0_29, %c2_30, %c0_31, %c0_32] : memref<1x3x8x128xf32, #tpu.memory_space<vmem>>, vector<1x1x8x128xf32>
    %37 = vector.shape_cast %36 : vector<1x1x8x128xf32> to vector<8x128xf32>
    %38 = vector.shape_cast %35 : vector<8x128xf32> to vector<1x1x8x128xf32>
    tpu.vector_store %arg5[%c0_29, %c2_30, %c0_31, %c0_32], %38 {strides = array<i32>} : memref<1x3x8x128xf32, #tpu.memory_space<vmem>>, vector<1x1x8x128xf32>,
    return
  }
  func.func @transform_0(%arg0: i32, %arg1: i32) -> (i32, i32) {
    %c1_i32 = arith.constant 1 : i32
    %0 = arith.muli %arg0, %c1_i32 : i32
    %1 = arith.addi %0, %arg1 : i32
    %c0_i32 = arith.constant 0 : i32
    %c0_i32_0 = arith.constant 0 : i32
    return %1, %c0_i32 : i32, i32
  }
  func.func @transform_1(%arg0: i32, %arg1: i32) -> (i32, i32) {
    %c1_i32 = arith.constant 1 : i32
    %0 = arith.muli %arg0, %c1_i32 : i32
    %1 = arith.addi %0, %arg1 : i32
    %c0_i32 = arith.constant 0 : i32
    %c0_i32_0 = arith.constant 0 : i32
    return %1, %c0_i32 : i32, i32
  }
  func.func @transform_2(%arg0: i32, %arg1: i32) -> (i32, i32) {
    %c1_i32 = arith.constant 1 : i32
    %0 = arith.muli %arg0, %c1_i32 : i32
    %1 = arith.addi %0, %arg1 : i32
    %c0_i32 = arith.constant 0 : i32
    %c0_i32_0 = arith.constant 0 : i32
    return %1, %c0_i32 : i32, i32
  }
  func.func @transform_3(%arg0: i32, %arg1: i32) -> (i32, i32, i32, i32) {
    %c0_i32 = arith.constant 0 : i32
    %c0_i32_0 = arith.constant 0 : i32
    %c0_i32_1 = arith.constant 0 : i32
    %c0_i32_2 = arith.constant 0 : i32
    return %arg0, %c0_i32, %c0_i32_0, %c0_i32_1 : i32, i32, i32, i32
  }
}

</mosaic_0001>

<bundles_post_ra>
// kernel: dice_loss.1
= control target key start
LH: loop header
LB: loop body
LE: loop exit
PB: predicated region body
PF: predicated region fallthrough
CT: control target
= control target key end

     0   :  { %s190_s0 = inlined_call_operand.vmem [shape: f32[16,128], index: 0, kind: input, shape index: {}]   ;;  %s191_s1 = inlined_call_operand.vmem [shape: f32[16,128], index: 1, kind: input, shape index: {}]   ;;  %s192_s2 = inlined_call_operand.vmem [shape: f32[16,128], index: 2, kind: input, shape index: {}]   ;;  %s193_s3 = inlined_call_operand.vmem [shape: f32[1,3,8,128], index: 3, kind: output, shape index: {}]  }
   0x1   :  { %v87_v0 = vld [vmem:[%s190_s0] sm:$0xff]  ;;  %v88_v1 = vld [vmem:[%s190_s0 + $0x8] sm:$0xff] }
   0x2   :  { %v89_v2 = vld [vmem:[%s191_s1] sm:$0xff]  ;;  %v90_v3 = vld [vmem:[%s191_s1 + $0x8] sm:$0xff] }
   0x3   :  { %v91_v4 = vld [vmem:[%s192_s2] sm:$0xff]  ;;  %v92_v5 = vld [vmem:[%s192_s2 + $0x8] sm:$0xff] }
   0x4   :  { %v93_v6 = vmul.f32 %v91_v4, %v87_v0  ;;  %v94_v7 = vmul.f32 %v92_v5, %v88_v1  ;;  %v95_v8 = vmul.f32 %v91_v4, %v89_v2  ;;  %v96_v9 = vmul.f32 %v92_v5, %v90_v3 }
   0x6   :  { %v97_v10 = vmul.f32 %v93_v6, %v89_v2  ;;  %v98_v11 = vmul.f32 %v94_v7, %v90_v3  ;;  %v101_v12 = vadd.f32 %v94_v7, %v93_v6  ;;  %v103_v13 = vadd.f32 %v96_v9, %v95_v8 }
   0x8   :  { %v99_v14 = vadd.f32 %v98_v11, %v97_v10  ;;  %139 = vst [vmem:[%s193_s3 + $0x8] sm:$0xff] %v101_v12  ;;  %141 = vst [vmem:[%s193_s3 + $0x10] sm:$0xff] %v103_v13 }
   0xa   :  { %107 = vst [vmem:[%s193_s3] sm:$0xff] %v99_v14 }

</bundles_post_ra>
